<compile_context>
chip_gen: v5e
topology: v5e:2x2
jax: 0.10.0
libtpu: 0.0.40
codegen_flags: <defaults>
</compile_context>

<pallas_src>
import jax
import jax.numpy as jnp
from jax.experimental import pallas as pl
from jax.experimental.pallas import tpu as pltpu

_EPS = 1e-08
_WEIGHT = 10.0
_TILE_BUDGET_BYTES = 1 * 1024 * 1024  # per-input, per-buffer VMEM tile target


def active_contour_loss(y_pred, y_true, weight=_WEIGHT):
    """y_pred, y_true: (B, C, H, W) float arrays.  Returns scalar loss."""
    assert y_pred.shape == y_true.shape, (y_pred.shape, y_true.shape)
    B, C, H, W = y_pred.shape
    assert H >= 3 and W >= 3, "ActiveContourLoss needs H >= 3 and W >= 3"
    BC = B * C

    # Free reshape; keep the native dtype (cast to f32 happens in-kernel).
    p_all = y_pred.reshape(BC, H, W)
    t_all = y_true.reshape(BC, H, W)

    # Tile selection from the PADDED per-plane VMEM footprint.
    pad_h = ((H + 7) // 8) * 8
    pad_w = ((W + 127) // 128) * 128
    padded_plane_bytes = pad_h * pad_w * 4
    max_tb = max(1, _TILE_BUDGET_BYTES // padded_plane_bytes)
    tb = int(min(max_tb, BC))
    n_tiles = pl.cdiv(BC, tb)

    # 2-way parallel leading axis (v7x megacore); sequential on v5e/v6e.
    n_split = 2 if n_tiles >= 2 else 1
    steps_per_core = pl.cdiv(n_tiles, n_split)
    needs_mask = (n_split * steps_per_core * tb) != BC
    has_oob_tile = (n_split * steps_per_core) > n_tiles
    last_tile = n_tiles - 1

    inv_n_len = 1.0 / float(BC * (H - 2) * (W - 2))
    inv_n_reg = 1.0 / float(BC * H * W)
    w_scalar = float(weight)

    def kernel(p_ref, t_ref, out_ref, len_acc, reg_acc):
        core = pl.program_id(0)
        step = pl.program_id(1)

        @pl.when(step == 0)
        def _init():
            len_acc[...] = jnp.zeros_like(len_acc)
            reg_acc[...] = jnp.zeros_like(reg_acc)

        p = p_ref[...].astype(jnp.float32)   # (tb, H, W)
        t = t_ref[...].astype(jnp.float32)

        # --- contour (length) term on the interior (H-2, W-2) window ---
        # dr[i, j] = p[i+2, j] - p[i+1, j]; dc[i, j] = p[i, j+2] - p[i, j+1]
        dr = p[:, 2:H, 0:W - 2] - p[:, 1:H - 1, 0:W - 2]
        dc = p[:, 0:H - 2, 2:W] - p[:, 0:H - 2, 1:W - 1]
        len_term = jnp.sqrt(dr * dr + dc * dc + _EPS)     # (tb, H-2, W-2)

        # --- fused region term: p*(t-1)^2 + (1-p)*t^2 == t*t - 2*p*t + p ---
        reg_term = t * (t - 2.0 * p) + p                   # (tb, H, W)

        if needs_mask:
            tile_idx = core * steps_per_core + step        # unclamped index
            plane0 = tile_idx * tb
            ids = jax.lax.broadcasted_iota(jnp.int32, (tb, 1, 1), 0)
            valid = (plane0 + ids) < BC
            len_term = jnp.where(valid, len_term, 0.0)
            reg_term = jnp.where(valid, reg_term, 0.0)

        # Per-step: leading-axis (VALU) reduce only; XLU reduce deferred.
        len_acc[...] += jnp.sum(len_term, axis=0)
        reg_acc[...] += jnp.sum(reg_term, axis=0)

        @pl.when(step == pl.num_programs(1) - 1)
        def _finalize():
            ls = jnp.sum(len_acc[...], axis=0, keepdims=True)   # (1, W-2)
            ls = jnp.sum(ls, axis=1, keepdims=True)             # (1, 1)
            rs = jnp.sum(reg_acc[...], axis=0, keepdims=True)   # (1, W)
            rs = jnp.sum(rs, axis=1, keepdims=True)             # (1, 1)
            out_ref[...] = w_scalar * (ls * inv_n_len) + rs * inv_n_reg

    if has_oob_tile:
        # Clamp fully-out-of-range tail tiles to the last real tile; their
        # contribution is zeroed by the plane-index mask in the kernel.
        def plane_map(c, i):
            return (jnp.minimum(c * steps_per_core + i, last_tile), 0, 0)
    else:
        def plane_map(c, i):
            return (c * steps_per_core + i, 0, 0)

    tile_spec = pl.BlockSpec((tb, H, W), plane_map)
    elem_bytes = jnp.dtype(y_pred.dtype).itemsize

    out = pl.pallas_call(
        kernel,
        out_shape=jax.ShapeDtypeStruct((n_split, 1), jnp.float32),
        grid_spec=pltpu.PrefetchScalarGridSpec(
            num_scalar_prefetch=0,
            grid=(n_split, steps_per_core),
            in_specs=[tile_spec, tile_spec],
            out_specs=pl.BlockSpec((1, 1), lambda c, i: (c, 0)),
            scratch_shapes=[
                pltpu.VMEM((H - 2, W - 2), jnp.float32),  # sum sqrt(.) partial
                pltpu.VMEM((H, W), jnp.float32),          # fused region partial
            ]),
        compiler_params=pltpu.CompilerParams(
            dimension_semantics=("parallel", "arbitrary"),
            vmem_limit_bytes=32 * 1024 * 1024),
        cost_estimate=pl.CostEstimate(
            flops=15 * BC * H * W,
            transcendentals=BC * (H - 2) * (W - 2),
            bytes_accessed=2 * BC * H * W * elem_bytes + 4 * n_split),
    )(p_all, t_all)

    # Per-core partials already carry the global means/weight; just add them.
    return jnp.sum(out)


def _reference(y_pred, y_true, weight=_WEIGHT):
    """Pure-JAX mirror of ActiveContourLoss.forward."""
    y_pred = y_pred.astype(jnp.float32)
    y_true = y_true.astype(jnp.float32)
    delta_r = y_pred[:, :, 1:, :] - y_pred[:, :, :-1, :]
    delta_c = y_pred[:, :, :, 1:] - y_pred[:, :, :, :-1]
    delta_r = delta_r[:, :, 1:, :-2] ** 2
    delta_c = delta_c[:, :, :-2, 1:] ** 2
    delta_pred = jnp.abs(delta_r + delta_c)
    lenth = jnp.mean(jnp.sqrt(delta_pred + _EPS))
    region_in = jnp.mean(y_pred * (y_true - 1.0) ** 2)
    region_out = jnp.mean((1.0 - y_pred) * (y_true - 0.0) ** 2)
    return weight * lenth + region_in + region_out


if __name__ == "__main__":
    key = jax.random.PRNGKey(0)
    k1, k2 = jax.random.split(key)
    B, C, H, W = 2, 4, 16, 16
    y_pred = jax.random.uniform(k1, (B, C, H, W), dtype=jnp.float32)
    y_true = (jax.random.uniform(k2, (B, C, H, W)) > 0.5).astype(jnp.float32)

    out = jax.block_until_ready(active_contour_loss(y_pred, y_true))
    ref = jax.block_until_ready(_reference(y_pred, y_true))
    assert jnp.isfinite(out), out
    assert jnp.allclose(out, ref, rtol=1e-4, atol=1e-6), (out, ref)
    print("KERNEL_OK")
</pallas_src>

<mosaic_0001>
module attributes {stable_mosaic.version = 11 : i64} {
  func.func @kernel(%arg0: i32, %arg1: i32, %arg2: memref<8x16x16xf32, #tpu.memory_space<vmem>>, %arg3: memref<8x16x16xf32, #tpu.memory_space<vmem>>, %arg4: memref<1x1xf32, #tpu.memory_space<vmem>>, %arg5: memref<14x14xf32, #tpu.memory_space<vmem>>, %arg6: memref<16x16xf32, #tpu.memory_space<vmem>>) attributes {dimension_semantics = [#tpu.dimension_semantics<parallel>, #tpu.dimension_semantics<arbitrary>], iteration_bounds = array<i64: 1, 1>, scalar_prefetch = 0 : i64, scratch_operands = 2 : i64, tpu.core_type = #tpu.core_type<tc>, window_params = [{transform_indices = @transform_0, window_bounds = array<i64: 8, 16, 16>}, {transform_indices = @transform_1, window_bounds = array<i64: 8, 16, 16>}, {transform_indices = @transform_2, window_bounds = array<i64: 1, 1>}]} {
    %c0_i32 = arith.constant 0 : i32
    %0 = arith.cmpi eq, %arg1, %c0_i32 : i32
    %1 = arith.extui %0 : i1 to i32
    %c0_i32_0 = arith.constant 0 : i32
    %2 = arith.cmpi ne, %1, %c0_i32_0 : i32
    scf.if %2 {
      %cst_19 = arith.constant 0.000000e+00 : f32
      %33 = vector.broadcast %cst_19 : f32 to vector<14x14xf32>
      %c0_20 = arith.constant 0 : index
      %c0_21 = arith.constant 0 : index
      %34 = vector.load %arg5[%c0_20, %c0_21] : memref<14x14xf32, #tpu.memory_space<vmem>>, vector<14x14xf32>
      tpu.vector_store %arg5[%c0_20, %c0_21], %33 {strides = array<i32>} : memref<14x14xf32, #tpu.memory_space<vmem>>, vector<14x14xf32>,
      %cst_22 = arith.constant 0.000000e+00 : f32
      %35 = vector.broadcast %cst_22 : f32 to vector<16x16xf32>
      %c0_23 = arith.constant 0 : index
      %c0_24 = arith.constant 0 : index
      %36 = vector.load %arg6[%c0_23, %c0_24] : memref<16x16xf32, #tpu.memory_space<vmem>>, vector<16x16xf32>
      tpu.vector_store %arg6[%c0_23, %c0_24], %35 {strides = array<i32>} : memref<16x16xf32, #tpu.memory_space<vmem>>, vector<16x16xf32>,
    } else {
    }
    %c0 = arith.constant 0 : index
    %c0_1 = arith.constant 0 : index
    %c0_2 = arith.constant 0 : index
    %3 = vector.load %arg2[%c0, %c0_1, %c0_2] : memref<8x16x16xf32, #tpu.memory_space<vmem>>, vector<8x16x16xf32>
    %c0_3 = arith.constant 0 : index
    %c0_4 = arith.constant 0 : index
    %c0_5 = arith.constant 0 : index
    %4 = vector.load %arg3[%c0_3, %c0_4, %c0_5] : memref<8x16x16xf32, #tpu.memory_space<vmem>>, vector<8x16x16xf32>
    %5 = vector.extract_strided_slice %3 {offsets = [0, 2, 0], sizes = [8, 14, 14], strides = [1, 1, 1]} : vector<8x16x16xf32> to vector<8x14x14xf32>
    %6 = vector.extract_strided_slice %3 {offsets = [0, 1, 0], sizes = [8, 14, 14], strides = [1, 1, 1]} : vector<8x16x16xf32> to vector<8x14x14xf32>
    %7 = arith.subf %5, %6 : vector<8x14x14xf32>
    %8 = vector.extract_strided_slice %3 {offsets = [0, 0, 2], sizes = [8, 14, 14], strides = [1, 1, 1]} : vector<8x16x16xf32> to vector<8x14x14xf32>
    %9 = vector.extract_strided_slice %3 {offsets = [0, 0, 1], sizes = [8, 14, 14], strides = [1, 1, 1]} : vector<8x16x16xf32> to vector<8x14x14xf32>
    %10 = arith.subf %8, %9 : vector<8x14x14xf32>
    %11 = arith.mulf %7, %7 : vector<8x14x14xf32>
    %12 = arith.mulf %10, %10 : vector<8x14x14xf32>
    %13 = arith.addf %11, %12 : vector<8x14x14xf32>
    %cst = arith.constant 9.99999993E-9 : f32
    %14 = vector.broadcast %cst : f32 to vector<8x14x14xf32>
    %15 = arith.addf %13, %14 : vector<8x14x14xf32>
    %16 = math.sqrt %15 : vector<8x14x14xf32>
    %cst_6 = arith.constant 2.000000e+00 : f32
    %17 = vector.broadcast %cst_6 : f32 to vector<8x16x16xf32>
    %18 = arith.mulf %17, %3 : vector<8x16x16xf32>
    %19 = arith.subf %4, %18 : vector<8x16x16xf32>
    %20 = arith.mulf %4, %19 : vector<8x16x16xf32>
    %21 = arith.addf %20, %3 : vector<8x16x16xf32>
    %c0_7 = arith.constant 0 : index
    %c0_8 = arith.constant 0 : index
    %22 = vector.load %arg5[%c0_7, %c0_8] : memref<14x14xf32, #tpu.memory_space<vmem>>, vector<14x14xf32>
    %cst_9 = arith.constant dense<0.000000e+00> : vector<14x14xf32>
    %23 = vector.multi_reduction <add>, %16, %cst_9 [0] : vector<8x14x14xf32> to vector<14x14xf32>
    %24 = arith.addf %22, %23 : vector<14x14xf32>
    %c0_10 = arith.constant 0 : index
    %c0_11 = arith.constant 0 : index
    %25 = vector.load %arg5[%c0_10, %c0_11] : memref<14x14xf32, #tpu.memory_space<vmem>>, vector<14x14xf32>
    tpu.vector_store %arg5[%c0_10, %c0_11], %24 {strides = array<i32>} : memref<14x14xf32, #tpu.memory_space<vmem>>, vector<14x14xf32>,
    %c0_12 = arith.constant 0 : index
    %c0_13 = arith.constant 0 : index
    %26 = vector.load %arg6[%c0_12, %c0_13] : memref<16x16xf32, #tpu.memory_space<vmem>>, vector<16x16xf32>
    %cst_14 = arith.constant dense<0.000000e+00> : vector<16x16xf32>
    %27 = vector.multi_reduction <add>, %21, %cst_14 [0] : vector<8x16x16xf32> to vector<16x16xf32>
    %28 = arith.addf %26, %27 : vector<16x16xf32>
    %c0_15 = arith.constant 0 : index
    %c0_16 = arith.constant 0 : index
    %29 = vector.load %arg6[%c0_15, %c0_16] : memref<16x16xf32, #tpu.memory_space<vmem>>, vector<16x16xf32>
    tpu.vector_store %arg6[%c0_15, %c0_16], %28 {strides = array<i32>} : memref<16x16xf32, #tpu.memory_space<vmem>>, vector<16x16xf32>,
    %c0_i32_17 = arith.constant 0 : i32
    %30 = arith.cmpi eq, %arg1, %c0_i32_17 : i32
    %31 = arith.extui %30 : i1 to i32
    %c0_i32_18 = arith.constant 0 : i32
    %32 = arith.cmpi ne, %31, %c0_i32_18 : i32
    scf.if %32 {
      %c0_19 = arith.constant 0 : index
      %c0_20 = arith.constant 0 : index
      %33 = vector.load %arg5[%c0_19, %c0_20] : memref<14x14xf32, #tpu.memory_space<vmem>>, vector<14x14xf32>
      %cst_21 = arith.constant dense<0.000000e+00> : vector<14xf32>
      %34 = vector.multi_reduction <add>, %33, %cst_21 [0] : vector<14x14xf32> to vector<14xf32>
      %35 = vector.shape_cast %34 : vector<14xf32> to vector<1x14xf32>
      %cst_22 = arith.constant dense<0.000000e+00> : vector<1xf32>
      %36 = vector.multi_reduction <add>, %35, %cst_22 [1] : vector<1x14xf32> to vector<1xf32>
      %37 = vector.shape_cast %36 : vector<1xf32> to vector<1x1xf32>
      %c0_23 = arith.constant 0 : index
      %c0_24 = arith.constant 0 : index
      %38 = vector.load %arg6[%c0_23, %c0_24] : memref<16x16xf32, #tpu.memory_space<vmem>>, vector<16x16xf32>
      %cst_25 = arith.constant dense<0.000000e+00> : vector<16xf32>
      %39 = vector.multi_reduction <add>, %38, %cst_25 [0] : vector<16x16xf32> to vector<16xf32>
      %40 = vector.shape_cast %39 : vector<16xf32> to vector<1x16xf32>
      %cst_26 = arith.constant dense<0.000000e+00> : vector<1xf32>
      %41 = vector.multi_reduction <add>, %40, %cst_26 [1] : vector<1x16xf32> to vector<1xf32>
      %42 = vector.shape_cast %41 : vector<1xf32> to vector<1x1xf32>
      %cst_27 = arith.constant 6.37755089E-4 : f32
      %43 = vector.broadcast %cst_27 : f32 to vector<1x1xf32>
      %44 = arith.mulf %37, %43 : vector<1x1xf32>
      %cst_28 = arith.constant 1.000000e+01 : f32
      %45 = vector.broadcast %cst_28 : f32 to vector<1x1xf32>
      %46 = arith.mulf %45, %44 : vector<1x1xf32>
      %cst_29 = arith.constant 4.8828125E-4 : f32
      %47 = vector.broadcast %cst_29 : f32 to vector<1x1xf32>
      %48 = arith.mulf %42, %47 : vector<1x1xf32>
      %49 = arith.addf %46, %48 : vector<1x1xf32>
      %c0_30 = arith.constant 0 : index
      %c0_31 = arith.constant 0 : index
      %50 = vector.load %arg4[%c0_30, %c0_31] : memref<1x1xf32, #tpu.memory_space<vmem>>, vector<1x1xf32>
      tpu.vector_store %arg4[%c0_30, %c0_31], %49 {strides = array<i32>} : memref<1x1xf32, #tpu.memory_space<vmem>>, vector<1x1xf32>,
    } else {
    }
    return
  }
  func.func @transform_0(%arg0: i32, %arg1: i32) -> (i32, i32, i32) {
    %c1_i32 = arith.constant 1 : i32
    %0 = arith.muli %arg0, %c1_i32 : i32
    %1 = arith.addi %0, %arg1 : i32
    %c0_i32 = arith.constant 0 : i32
    %c0_i32_0 = arith.constant 0 : i32
    %c0_i32_1 = arith.constant 0 : i32
    return %1, %c0_i32, %c0_i32_0 : i32, i32, i32
  }
  func.func @transform_1(%arg0: i32, %arg1: i32) -> (i32, i32, i32) {
    %c1_i32 = arith.constant 1 : i32
    %0 = arith.muli %arg0, %c1_i32 : i32
    %1 = arith.addi %0, %arg1 : i32
    %c0_i32 = arith.constant 0 : i32
    %c0_i32_0 = arith.constant 0 : i32
    %c0_i32_1 = arith.constant 0 : i32
    return %1, %c0_i32, %c0_i32_0 : i32, i32, i32
  }
  func.func @transform_2(%arg0: i32, %arg1: i32) -> (i32, i32) {
    %c0_i32 = arith.constant 0 : i32
    %c0_i32_0 = arith.constant 0 : i32
    return %arg0, %c0_i32 : i32, i32
  }
}

</mosaic_0001>

<bundles_post_ra>
// kernel: tpu_custom_call.1
= control target key start
LH: loop header
LB: loop body
LE: loop exit
PB: predicated region body
PF: predicated region fallthrough
CT: control target
= control target key end

     0   :  { %7 = vsyncpa [#allocation5], 0  ;;  %s1448_s0 = inlined_call_operand.hbm [shape: f32[8,16,16], index: 0, kind: input, shape index: {}]   ;;  %s1449_s1 = inlined_call_operand.hbm [shape: f32[8,16,16], index: 1, kind: input, shape index: {}]   ;;  %s1450_s2 = inlined_call_operand.hbm [shape: f32[1,1], index: 2, kind: output, shape index: {}]  }
   0x1   :  { %8 = vsyncpa [#allocation8], 0 }
   0x2   :  { %9 = vsyncpa [#allocation6], 0  ;;  %s19_s11 = sshll.u32 %s1448_s0, 4  ;;  %s904_s12 = smov [#allocation4]   ;;  %s20_s11 = int_to_ptr.hbm [resolvable:$true] %s19_s11 }
   0x3   :  { %s21_s13 = sshll.u32 %s904_s12, 4  ;;  %s37_s16 = sshll.u32 %s1449_s1, 4  ;;  %s22_s13 = int_to_ptr.vmem [resolvable:$true] %s21_s13  ;;  %s38_s16 = int_to_ptr.hbm [resolvable:$true] %s37_s16 }
   0x4   :  { %s905_s17 = smov 128   ;;  %s906_s18 = smov 8  }
   0x5   :  { %27 = dma.hbm_to_vmem [thread:$0]  %s20_s11, 2048, %s22_s13, [#allocation5], %s905_s17, %s905_s17, %s906_s18  }
   0x6   :  { %s907_s19 = smov [#allocation7]  }
   0x7   :  { %s39_s20 = sshll.u32 %s907_s19, 4  ;;  %s40_s20 = int_to_ptr.vmem [resolvable:$true] %s39_s20 }
   0x8   :  { %45 = dma.hbm_to_vmem [thread:$0]  %s38_s16, 2048, %s40_s20, [#allocation8], %s905_s17, %s905_s17, %s906_s18  }
   0x9   :  { %898 = dma.done.wait [#allocation5], 2048  }
   0xa   :  { %899 = vsyncadd [#allocation5], 4294965248 }
   0xb   :  { %900 = dma.done.wait [#allocation8], 2048  }
   0xc   :  { %901 = vsyncadd [#allocation8], 4294965248  ;;  %v933_v0 = vld [vmem:[#allocation4 + $0x10] sm:$0xff]  ;;  %v935_v1 = vld [vmem:[#allocation4] sm:$0xff]  ;;  %s908_s0 = smov 1   ;;  %s909_s1 = smov 126  }
   0xd   :  { %178 = vrot.lane.b32.xlu1 %v933_v0, %s908_s0  ;;  %174 = vrot.lane.b32.xlu0 %v935_v1, %s908_s0  ;;  %v939_v2 = vld [vmem:[#allocation4 + $0x20] sm:$0xff]  ;;  %v942_v3 = vld [vmem:[#allocation4 + $0x18] sm:$0xff]  ;;  %v944_v4 = vld [vmem:[#allocation4 + $0x8] sm:$0xff]  ;;  %vm286_vm0 = vcmask 1041408   ;;  %vm66_vm1 = vcmask 130048   ;;  %vm117_vm2 = vcmask 1040384  }
   0xe   :  { %182 = vrot.lane.b32.xlu2 %v939_v2, %s908_s0  ;;  %v946_v5 = vld [vmem:[#allocation4 + $0x28] sm:$0xff]  ;;  %v951_v6 = vld [vmem:[#allocation4 + $0x38] sm:$0xff]  ;;  %v953_v7 = vld [vmem:[#allocation4 + $0x30] sm:$0xff]  ;;  %vm649_vm5 = vcmask 113666   ;;  %vm62_vm13 = vcmask 113664   ;;  %s911_s21 = smov [#allocation9]  }
   0xf   :  { %v955_v8 = vld [vmem:[#allocation4 + $0x40] sm:$0xff]  ;;  %v960_v9 = vld [vmem:[#allocation4 + $0x50] sm:$0xff]  ;;  %v962_v10 = vld [vmem:[#allocation4 + $0x48] sm:$0xff]  ;;  %s773_s22 = sshll.u32 %s911_s21, 4  ;;  %s775_s25 = sshll.u32 %s1450_s2, 4  ;;  %s774_s22 = int_to_ptr.vmem [resolvable:$true] %s773_s22  ;;  %s776_s25 = int_to_ptr.hbm [resolvable:$true] %s775_s25 }
  0x10   :  { %v964_v11 = vld [vmem:[#allocation4 + $0x58] sm:$0xff]  ;;  %v969_v12 = vld [vmem:[#allocation4 + $0x68] sm:$0xff]  ;;  %v971_v13 = vld [vmem:[#allocation4 + $0x60] sm:$0xff] }
  0x11   :  { %v973_v14 = vld [vmem:[#allocation4 + $0x70] sm:$0xff]  ;;  %v978_v15 = vld [vmem:[#allocation4 + $0x78] sm:$0xff] }
  0x15   :  { %180 = vrot.lane.b32.xlu1 %v942_v3, %s908_s0  ;;  %176 = vrot.lane.b32.xlu0 %v944_v4, %s908_s0 }
  0x16   :  { %184 = vrot.lane.b32.xlu2 %v946_v5, %s908_s0 }
  0x1d   :  { %188 = vrot.lane.b32.xlu1 %v951_v6, %s908_s0  ;;  %186 = vrot.lane.b32.xlu0 %v953_v7, %s908_s0 }
  0x1e   :  { %190 = vrot.lane.b32.xlu2 %v955_v8, %s908_s0 }
  0x25   :  { %194 = vrot.lane.b32.xlu1 %v960_v9, %s908_s0  ;;  %192 = vrot.lane.b32.xlu0 %v962_v10, %s908_s0 }
  0x26   :  { %196 = vrot.lane.b32.xlu2 %v964_v11, %s908_s0 }
  0x2d   :  { %200 = vrot.lane.b32.xlu1 %v969_v12, %s908_s0  ;;  %198 = vrot.lane.b32.xlu0 %v971_v13, %s908_s0 }
  0x2e   :  { %202 = vrot.lane.b32.xlu2 %v973_v14, %s908_s0 }
  0x35   :  { %204 = vrot.lane.b32.xlu0 %v978_v15, %s908_s0 }
  0x68   :  { %v183_v16 = vpop.permute.xlu2 %182 }
  0x69   :  { %v226_v17 = vsub.f32 %v939_v2, %v183_v16 }
  0x6b   :  { %v258_v18 = vmul.f32 %v226_v17, %v226_v17 }
  0x6d   :  { %v293_v19 = vrot.slane %v258_v18, 6 }
  0x6f   :  { %319 = vrot.lane.b32.xlu2 %v293_v19, %s909_s1 }
  0x70   :  { %v185_v20 = vpop.permute.xlu2 %184 }
  0x71   :  { %v227_v32 = vsub.f32 %v946_v5, %v185_v20 }
  0x73   :  { %v259_v36 = vmul.f32 %v227_v32, %v227_v32 }
  0x75   :  { %v294_v38 = vrot.slane %v259_v36, 6 }
  0x77   :  { %v295_v44 = vsel %vm286_vm0, %v293_v19, %v294_v38 }
  0x78   :  { %v191_v21 = vpop.permute.xlu2 %190 }
  0x79   :  { %v230_v28 = vsub.f32 %v955_v8, %v191_v21 }
  0x7b   :  { %v991_v31 = vmul.f32 %v230_v28, %v230_v28 }
  0x7d   :  { %v299_v35 = vrot.slane %v991_v31, 6 }
  0x7f   :  { %v179_v22 = vpop.permute.xlu1 %178  ;;  %v175_v23 = vpop.permute.xlu0 %174 }
  0x80   :  { %v224_v24 = vsub.f32 %v933_v0, %v179_v22  ;;  %v222_v25 = vsub.f32 %v935_v1, %v175_v23  ;;  %v197_v37 = vpop.permute.xlu2 %196 }
  0x81   :  { %v233_v43 = vsub.f32 %v964_v11, %v197_v37 }
  0x82   :  { %v985_v26 = vmul.f32 %v224_v24, %v224_v24  ;;  %v254_v27 = vmul.f32 %v222_v25, %v222_v25 }
  0x83   :  { %v265_v46 = vmul.f32 %v233_v43, %v233_v43  ;;  %v583_v43 = vmul.f32 2.0, %v935_v1 }
  0x84   :  { %v290_v29 = vrot.slane %v985_v26, 6  ;;  %v287_v30 = vrot.slane %v254_v27, 6 }
  0x85   :  { %v303_v53 = vrot.slane %v265_v46, 6  ;;  %v586_v46 = vmul.f32 2.0, %v942_v3 }
  0x86   :  { %315 = vrot.lane.b32.xlu0 %v290_v29, %s909_s1  ;;  %311 = vrot.lane.b32.xlu1 %v287_v30, %s909_s1 }
  0x87   :  { %v181_v33 = vpop.permute.xlu1 %180  ;;  %v177_v34 = vpop.permute.xlu0 %176 }
  0x88   :  { %v203_v50 = vpop.permute.xlu2 %202  ;;  %v223_v51 = vsub.f32 %v944_v4, %v177_v34  ;;  %v225_v61 = vsub.f32 %v942_v3, %v181_v33 }
  0x89   :  { %v236_v54 = vsub.f32 %v973_v14, %v203_v50  ;;  %v88_v50 = vld [vmem:[#allocation7 + $0x18] sm:$0xff] }
  0x8a   :  { %v255_v56 = vmul.f32 %v223_v51, %v223_v51  ;;  %v257_v19 = vmul.f32 %v225_v61, %v225_v61  ;;  %v86_v51 = vld [vmem:[#allocation7 + $0x8] sm:$0xff]  ;;  %v589_v61 = vmul.f32 2.0, %v953_v7 }
  0x8b   :  { %v268_v59 = vmul.f32 %v236_v54, %v236_v54 }
  0x8c   :  { %v288_v62 = vrot.slane %v255_v56, 6  ;;  %v291_v23 = vrot.slane %v257_v19, 6 }
  0x8d   :  { %v308_v17 = vrot.slane %v268_v59, 6 }
  0x8e   :  { %327 = vrot.lane.b32.xlu0 %v299_v35, %s909_s1  ;;  %v289_v21 = vsel %vm286_vm0, %v287_v30, %v288_v62  ;;  %v292_v30 = vsel %vm286_vm0, %v290_v29, %v291_v23  ;;  %v590_v62 = vmul.f32 2.0, %v951_v6 }
  0x8f   :  { %v189_v39 = vpop.permute.xlu1 %188  ;;  %v187_v40 = vpop.permute.xlu0 %186 }
  0x90   :  { %v228_v41 = vsub.f32 %v953_v7, %v187_v40  ;;  %v229_v63 = vsub.f32 %v951_v6, %v189_v39 }
  0x92   :  { %v260_v42 = vmul.f32 %v228_v41, %v228_v41  ;;  %v261_v20 = vmul.f32 %v229_v63, %v229_v63  ;;  %v124_v41 = vrot.slane %v939_v2, 7  ;;  %v91_v63 = vld [vmem:[#allocation7 + $0x30] sm:$0xff] }
  0x94   :  { %v296_v45 = vrot.slane %v260_v42, 6  ;;  %v297_v24 = vrot.slane %v261_v20, 6  ;;  %v585_v42 = vmul.f32 2.0, %v933_v0 }
  0x96   :  { %321 = vrot.lane.b32.xlu0 %v295_v44, %s909_s1  ;;  %323 = vrot.lane.b32.xlu1 %v296_v45, %s909_s1  ;;  %v298_v32 = vsel %vm286_vm0, %v296_v45, %v297_v24  ;;  %v87_v44 = vld [vmem:[#allocation7 + $0x10] sm:$0xff]  ;;  %v85_v45 = vld [vmem:[#allocation7] sm:$0xff] }
  0x97   :  { %v195_v47 = vpop.permute.xlu1 %194  ;;  %v193_v48 = vpop.permute.xlu0 %192 }
  0x98   :  { %v232_v49 = vsub.f32 %v960_v9, %v195_v47  ;;  %v231_v25 = vsub.f32 %v962_v10, %v193_v48  ;;  %v584_v47 = vmul.f32 2.0, %v944_v4  ;;  %v601_v48 = vsub.f32 %v87_v44, %v585_v42 }
  0x9a   :  { %v264_v52 = vmul.f32 %v232_v49, %v232_v49  ;;  %v263_v28 = vmul.f32 %v231_v25, %v231_v25  ;;  %v599_v49 = vsub.f32 %v85_v45, %v583_v43  ;;  %v600_v56 = vsub.f32 %v86_v51, %v584_v47  ;;  %v95_v47 = vld [vmem:[#allocation7 + $0x50] sm:$0xff] }
  0x9b   :  { %v605_v25 = vsub.f32 %v91_v63, %v589_v61 }
  0x9c   :  { %v302_v55 = vrot.slane %v264_v52, 6  ;;  %v300_v34 = vrot.slane %v263_v28, 6  ;;  %v587_v52 = vmul.f32 2.0, %v939_v2  ;;  %v615_v59 = vmul.f32 %v599_v49, %v85_v45 }
  0x9d   :  { %v593_v45 = vmul.f32 2.0, %v960_v9 }
  0x9e   :  { %331 = vrot.lane.b32.xlu2 %v302_v55, %s909_s1  ;;  %v304_v57 = vsel %vm286_vm0, %v302_v55, %v303_v53  ;;  %v301_v38 = vsel %vm286_vm0, %v299_v35, %v300_v34  ;;  %v162_v35 = vsub.f32 %v939_v2, %v124_v41  ;;  %v89_v53 = vld [vmem:[#allocation7 + $0x20] sm:$0xff]  ;;  %v602_v55 = vsub.f32 %v88_v50, %v586_v46 }
  0x9f   :  { %v199_v58 = vpop.permute.xlu0 %198  ;;  %333 = vrot.lane.b32.xlu0 %v304_v57, %s909_s1  ;;  %v201_v22 = vpop.permute.xlu1 %200  ;;  %v631_v23 = vadd.f32 %v615_v59, %v935_v1  ;;  %v591_v59 = vmul.f32 2.0, %v955_v8 }
  0xa0   :  { %v234_v60 = vsub.f32 %v971_v13, %v199_v58  ;;  %v235_v26 = vsub.f32 %v969_v12, %v201_v22  ;;  %v242_v54 = vmul.f32 %v162_v35, %v162_v35  ;;  %v617_v58 = vmul.f32 %v601_v48, %v87_v44 }
  0xa1   :  { %v618_v20 = vmul.f32 %v602_v55, %v88_v50  ;;  %v592_v48 = vmul.f32 2.0, %v962_v10 }
  0xa2   :  { %v266_v16 = vmul.f32 %v234_v60, %v234_v60  ;;  %v267_v31 = vmul.f32 %v235_v26, %v235_v26  ;;  %v603_v60 = vsub.f32 %v89_v53, %v587_v52  ;;  %v633_v22 = vadd.f32 %v617_v58, %v933_v0 }
  0xa3   :  { %v609_v58 = vsub.f32 %v95_v47, %v593_v45 }
  0xa4   :  { %v305_v18 = vrot.slane %v266_v16, 6  ;;  %v306_v36 = vrot.slane %v267_v31, 6  ;;  %v588_v16 = vmul.f32 2.0, %v946_v5  ;;  %v619_v24 = vmul.f32 %v603_v60, %v89_v53 }
  0xa5   :  { %v634_v31 = vadd.f32 %v618_v20, %v942_v3  ;;  %v96_v20 = vld [vmem:[#allocation7 + $0x58] sm:$0xff] }
  0xa6   :  { %313 = vrot.lane.b32.xlu2 %v289_v21, %s909_s1  ;;  %335 = vrot.lane.b32.xlu1 %v305_v18, %s909_s1  ;;  %v307_v39 = vsel %vm286_vm0, %v305_v18, %v306_v36  ;;  %v90_v18 = vld [vmem:[#allocation7 + $0x28] sm:$0xff]  ;;  %v616_v21 = vmul.f32 %v600_v56, %v86_v51  ;;  %v635_v34 = vadd.f32 %v619_v24, %v939_v2  ;;  %v119_v56 = vrot.slane %v944_v4, 7  ;;  %v97_v24 = vld [vmem:[#allocation7 + $0x60] sm:$0xff] }
  0xa7   :  { %339 = vrot.lane.b32.xlu0 %v308_v17, %s909_s1  ;;  %v205_v27 = vpop.permute.xlu0 %204  ;;  %v621_v36 = vmul.f32 %v605_v25, %v91_v63  ;;  %v713_v43 = vsel %vm66_vm1, %v634_v31, 0.0  ;;  %v94_v51 = vld [vmem:[#allocation7 + $0x48] sm:$0xff]  ;;  %v596_v63 = vmul.f32 2.0, %v969_v12 }
  0xa8   :  { %v237_v33 = vsub.f32 %v978_v15, %v205_v27  ;;  %v604_v27 = vsub.f32 %v90_v18, %v588_v16  ;;  %v700_v35 = vsel %vm66_vm1, %v635_v34, 0.0  ;;  %v608_v61 = vsub.f32 %v94_v51, %v592_v48 }
  0xa9   :  { %v637_v46 = vadd.f32 %v621_v36, %v953_v7  ;;  %v594_v16 = vmul.f32 2.0, %v964_v11 }
  0xaa   :  { %v269_v37 = vmul.f32 %v237_v33, %v237_v33  ;;  %v697_v33 = vsel %vm66_vm1, %v631_v23, 0.0  ;;  %v624_v36 = vmul.f32 %v608_v61, %v94_v51  ;;  %v597_v61 = vmul.f32 2.0, %v973_v14 }
  0xac   :  { %v309_v40 = vrot.slane %v269_v37, 6 }
  0xae   :  { %325 = vrot.lane.b32.xlu2 %v298_v32, %s909_s1  ;;  %317 = vrot.lane.b32.xlu1 %v292_v30, %s909_s1  ;;  %v310_v29 = vsel %vm286_vm0, %v308_v17, %v309_v40  ;;  %v92_v17 = vld [vmem:[#allocation7 + $0x38] sm:$0xff]  ;;  %v632_v32 = vadd.f32 %v616_v21, %v944_v4  ;;  %v698_v30 = vsel %vm66_vm1, %v633_v22, 0.0  ;;  %v133_v40 = vrot.slane %v960_v9, 7 }
  0xaf   :  { %v606_v26 = vsub.f32 %v92_v17, %v590_v62  ;;  %v699_v42 = vadd.f32 %v698_v30, %v697_v33  ;;  %v93_v62 = vld [vmem:[#allocation7 + $0x40] sm:$0xff]  ;;  %v130_v22 = vrot.slane %v955_v8, 7 }
  0xb0   :  { %v712_v44 = vsel %vm66_vm1, %v632_v32, 0.0  ;;  %v625_v32 = vmul.f32 %v609_v58, %v95_v47  ;;  %v607_v30 = vsub.f32 %v93_v62, %v591_v59 }
  0xb1   :  { %v622_v37 = vmul.f32 %v606_v26, %v92_v17  ;;  %v714_v53 = vadd.f32 %v713_v43, %v712_v44 }
  0xb2   :  { %v623_v51 = vmul.f32 %v607_v30, %v93_v62 }
  0xb3   :  { %v638_v49 = vadd.f32 %v622_v37, %v951_v6 }
  0xb5   :  { %v717_v23 = vsel %vm66_vm1, %v638_v49, 0.0  ;;  %v127_v49 = vrot.slane %v953_v7, 7 }
  0xb6   :  { %329 = vrot.lane.b32.xlu1 %v301_v38, %s909_s1  ;;  %337 = vrot.lane.b32.xlu2 %v307_v39, %s909_s1  ;;  %v620_v38 = vmul.f32 %v604_v27, %v90_v18  ;;  %v118_v39 = vrot.slane %v935_v1, 7  ;;  %v98_v18 = vld [vmem:[#allocation7 + $0x68] sm:$0xff] }
  0xb7   :  { %v612_v37 = vsub.f32 %v98_v18, %v596_v63 }
  0xb8   :  { %v636_v50 = vadd.f32 %v620_v38, %v946_v5  ;;  %v158_v52 = vsub.f32 %v935_v1, %v118_v39  ;;  %v702_v1 = vsel %vm66_vm1, %v637_v46, 0.0  ;;  %v120_v27 = vsel %vm117_vm2, %v118_v39, %v119_v56 }
  0xb9   :  { %v610_v38 = vsub.f32 %v96_v20, %v594_v16  ;;  %v159_v46 = vsub.f32 %v944_v4, %v120_v27  ;;  %v166_v39 = vsub.f32 %v955_v8, %v130_v22  ;;  %v628_v59 = vmul.f32 %v612_v37, %v98_v18 }
  0xba   :  { %v715_v17 = vsel %vm66_vm1, %v636_v50, 0.0  ;;  %v238_v21 = vmul.f32 %v158_v52, %v158_v52  ;;  %v128_v50 = vrot.slane %v951_v6, 7  ;;  %v598_v52 = vmul.f32 2.0, %v978_v15 }
  0xbb   :  { %v716_v34 = vadd.f32 %v715_v17, %v714_v53  ;;  %v626_v56 = vmul.f32 %v610_v38, %v96_v20  ;;  %v239_v63 = vmul.f32 %v159_v46, %v159_v46  ;;  %v246_v62 = vmul.f32 %v166_v39, %v166_v39 }
  0xbc   :  { %v129_v17 = vsel %vm117_vm2, %v127_v49, %v128_v50  ;;  %v641_v18 = vadd.f32 %v625_v32, %v960_v9  ;;  %v164_v27 = vsub.f32 %v953_v7, %v127_v49  ;;  %v644_v30 = vadd.f32 %v628_v59, %v969_v12 }
  0xbd   :  { %v718_v4 = vadd.f32 %v717_v23, %v716_v34  ;;  %v99_v23 = vld [vmem:[#allocation7 + $0x70] sm:$0xff]  ;;  %v125_v37 = vrot.slane %v946_v5, 7 }
  0xbe   :  { %341 = vrot.lane.b32.xlu1 %v310_v29, %s909_s1  ;;  %v121_v29 = vrot.slane %v933_v0, 7 }
  0xc0   :  { %v160_v55 = vsub.f32 %v933_v0, %v121_v29 }
  0xc2   :  { %v240_v26 = vmul.f32 %v160_v55, %v160_v55  ;;  %v640_v55 = vadd.f32 %v624_v36, %v962_v10  ;;  %v165_v36 = vsub.f32 %v951_v6, %v129_v17  ;;  %v244_v6 = vmul.f32 %v164_v27, %v164_v27 }
  0xc4   :  { %v245_v50 = vmul.f32 %v165_v36, %v165_v36 }
  0xc9   :  { %v320_v57 = vpop.permute.xlu2 %319 }
  0xca   :  { %v363_v19 = vadd.f32 %v320_v57, %v242_v54  ;;  %v168_v54 = vsub.f32 %v960_v9, %v133_v40  ;;  %v701_v57 = vadd.f32 %v700_v35, %v699_v42 }
  0xcc   :  { %v1041_v28 = vadd.f32 1e-08, %v363_v19  ;;  %v595_v19 = vmul.f32 2.0, %v971_v13  ;;  %v248_v25 = vmul.f32 %v168_v54, %v168_v54  ;;  %v1079_v31 = vadd.f32 %v702_v1, %v701_v57  ;;  %v100_v57 = vld [vmem:[#allocation7 + $0x78] sm:$0xff] }
  0xce   :  { %794 = vrsqrt.f32 %v1041_v28  ;;  %v611_v44 = vsub.f32 %v97_v24, %v595_v19  ;;  %v639_v19 = vadd.f32 %v623_v51, %v955_v8  ;;  %v126_v51 = vsel %vm117_vm2, %v124_v41, %v125_v37 }
  0xcf   :  { %vm446_vm3 = vcmp.eq.f32.partialorder %v1041_v28, inf  ;;  %vm448_vm4 = vcmp.eq.f32.partialorder %v1041_v28, 0.0 }
  0xd0   :  { %v627_v1 = vmul.f32 %v611_v44, %v97_v24  ;;  %v719_v24 = vsel %vm66_vm1, %v640_v55, 0.0  ;;  %v704_v44 = vsel %vm66_vm1, %v639_v19, 0.0  ;;  %v723_v55 = vsel %vm66_vm1, %v644_v30, 0.0 }
  0xd2   :  { %v643_v38 = vadd.f32 %v627_v1, %v971_v13 }
  0xd4   :  { %v1069_v60 = vpop.eup %794 }
  0xd5   :  { %v440_v33 = vmul.f32 %v1069_v60, %v1041_v28 }
  0xd7   :  { %v441_v53 = vmul.f32 %v1069_v60, %v440_v33 }
  0xd9   :  { %v442_v20 = vmul.f32 0.5, %v441_v53  ;;  %v705_v53 = vadd.f32 %v704_v44, %v1079_v31  ;;  %v163_v31 = vsub.f32 %v946_v5, %v126_v51 }
  0xf8   :  { %v332_v42 = vpop.permute.xlu2 %331  ;;  %v312_v43 = vpop.permute.xlu1 %311 }
  0xf9   :  { %v359_v45 = vadd.f32 %v312_v43, %v238_v21  ;;  %v316_v35 = vpop.permute.xlu0 %315  ;;  %v369_v47 = vadd.f32 %v332_v42, %v248_v25  ;;  %v614_v21 = vsub.f32 %v100_v57, %v598_v52  ;;  %v642_v25 = vadd.f32 %v626_v56, %v964_v11 }
  0xfa   :  { %v361_v48 = vadd.f32 %v316_v35, %v240_v26  ;;  %v613_v42 = vsub.f32 %v99_v23, %v597_v61  ;;  %v720_v43 = vadd.f32 %v719_v24, %v718_v4  ;;  %v443_v35 = vsub.f32 1.5, %v442_v20 }
  0xfb   :  { %v1091_v54 = vadd.f32 1e-08, %v359_v45  ;;  %v1097_v16 = vadd.f32 1e-08, %v369_v47  ;;  %v630_v45 = vmul.f32 %v614_v21, %v100_v57  ;;  %v721_v46 = vsel %vm66_vm1, %v642_v25, 0.0 }
  0xfc   :  { %v1094_v58 = vadd.f32 1e-08, %v361_v48  ;;  %v706_v52 = vsel %vm66_vm1, %v641_v18, 0.0  ;;  %v629_v4 = vmul.f32 %v613_v42, %v99_v23  ;;  %v708_v56 = vsel %vm66_vm1, %v643_v38, 0.0 }
  0xfd   :  { %796 = vrsqrt.f32 %v1091_v54  ;;  %v722_v57 = vadd.f32 %v721_v46, %v720_v43  ;;  %v646_v59 = vadd.f32 %v630_v45, %v978_v15  ;;  %v444_v1 = vmul.f32 %v1069_v60, %v443_v35 }
  0xfe   :  { %798 = vrsqrt.f32 %v1094_v58  ;;  %v707_v60 = vadd.f32 %v706_v52, %v705_v53  ;;  %v645_v23 = vadd.f32 %v629_v4, %v973_v14  ;;  %v136_v18 = vrot.slane %v971_v13, 7 }
  0xff   :  { %800 = vrsqrt.f32 %v1097_v16  ;;  %v137_v24 = vrot.slane %v969_v12, 7  ;;  %v445_v25 = vmul.f32 %v444_v1, %v1041_v28  ;;  %v724_v36 = vadd.f32 %v723_v55, %v722_v57 }
 0x100   :  { %v314_v26 = vpop.permute.xlu2 %313  ;;  %v725_v37 = vsel %vm66_vm1, %v646_v59, 0.0  ;;  %v449_v43 = vand.u32 2147483648, %v1041_v28  ;;  %v710_v46 = vsel %vm66_vm1, %v645_v23, 0.0  ;;  %v139_v1 = vrot.slane %v973_v14, 7 }
 0x101   :  { %v360_v33 = vadd.f32 %v314_v26, %v239_v63  ;;  %v328_v34 = vpop.permute.xlu0 %327  ;;  %v138_v44 = vsel %vm117_vm2, %v136_v18, %v137_v24  ;;  %v447_v9 = vsel %vm446_vm3, %v1041_v28, %v445_v25  ;;  %v170_v25 = vsub.f32 %v971_v13, %v136_v18 }
 0x102   :  { %v367_v32 = vadd.f32 %v328_v34, %v246_v62  ;;  %v134_v62 = vrot.slane %v964_v11, 7  ;;  %v171_v52 = vsub.f32 %v969_v12, %v138_v44  ;;  %v450_v53 = vsel %vm448_vm4, %v449_v43, %v447_v9 }
 0x103   :  { %v1113_v7 = vpop.eup %796  ;;  %v1116_v39 = vadd.f32 1e-08, %v360_v33  ;;  %v243_v33 = vmul.f32 %v163_v31, %v163_v31  ;;  %vm398_vm6 = vcmp.eq.f32.partialorder %v1091_v54, inf  ;;  %vm400_vm7 = vcmp.eq.f32.partialorder %v1091_v54, 0.0 }
 0x104   :  { %v1118_v47 = vpop.eup %798  ;;  %v392_v48 = vmul.f32 %v1113_v7, %v1091_v54  ;;  %v1122_v49 = vadd.f32 1e-08, %v367_v32  ;;  %v135_v34 = vsel %vm117_vm2, %v133_v40, %v134_v62  ;;  %v709_v32 = vadd.f32 %v708_v56, %v707_v60 }
 0x105   :  { %v1133_v61 = vpop.eup %800  ;;  %v416_v2 = vmul.f32 %v1118_v47, %v1094_v58  ;;  %802 = vrsqrt.f32 %v1116_v39  ;;  %v169_v35 = vsub.f32 %v964_v11, %v135_v34  ;;  %v1191_v62 = vsel %vm649_vm5, %v450_v53, 0.0 }
 0x106   :  { %v393_v17 = vmul.f32 %v1113_v7, %v392_v48  ;;  %804 = vrsqrt.f32 %v1122_v49  ;;  %v512_v5 = vmul.f32 %v1133_v61, %v1097_v16  ;;  %v1180_v11 = vadd.f32 %v710_v46, %v709_v32 }
 0x107   :  { %v417_v30 = vmul.f32 %v1118_v47, %v416_v2  ;;  %v249_v59 = vmul.f32 %v169_v35, %v169_v35  ;;  %vm518_vm8 = vcmp.eq.f32.partialorder %v1097_v16, inf  ;;  %v250_v44 = vmul.f32 %v170_v25, %v170_v25 }
 0x108   :  { %v324_v41 = vpop.permute.xlu1 %323  ;;  %v326_v63 = vpop.permute.xlu2 %325  ;;  %v394_v38 = vmul.f32 0.5, %v393_v17  ;;  %v513_v40 = vmul.f32 %v1133_v61, %v512_v5  ;;  %v521_v17 = vand.u32 2147483648, %v1097_v16  ;;  %vm422_vm9 = vcmp.eq.f32.partialorder %v1094_v58, inf }
 0x109   :  { %v365_v19 = vadd.f32 %v324_v41, %v244_v6  ;;  %v366_v21 = vadd.f32 %v326_v63, %v245_v50  ;;  %v322_v20 = vpop.permute.xlu0 %321  ;;  %v418_v6 = vmul.f32 0.5, %v417_v30  ;;  %v1171_v50 = vadd.f32 %v725_v37, %v724_v36 }
 0x10a   :  { %v364_v48 = vadd.f32 %v322_v20, %v243_v33  ;;  %v395_v51 = vsub.f32 1.5, %v394_v38  ;;  %v514_v57 = vmul.f32 0.5, %v513_v40  ;;  %v122_v63 = vrot.slane %v942_v3, 7 }
 0x10b   :  { %v1148_v26 = vadd.f32 1e-08, %v365_v19  ;;  %v1150_v27 = vadd.f32 1e-08, %v366_v21  ;;  %v1159_v42 = vpop.eup %802  ;;  %v419_v2 = vsub.f32 1.5, %v418_v6  ;;  %v251_v21 = vmul.f32 %v171_v52, %v171_v52 }
 0x10c   :  { %v1164_v45 = vpop.eup %804  ;;  %v404_v28 = vmul.f32 %v1159_v42, %v1116_v39  ;;  %v1185_v41 = vadd.f32 1e-08, %v364_v48  ;;  %v396_v19 = vmul.f32 %v1113_v7, %v395_v51  ;;  %v515_v5 = vsub.f32 1.5, %v514_v57 }
 0x10d   :  { %806 = vrsqrt.f32 %v1148_v26  ;;  %v488_v55 = vmul.f32 %v1164_v45, %v1122_v49  ;;  %v172_v33 = vsub.f32 %v973_v14, %v139_v1  ;;  %v420_v7 = vmul.f32 %v1118_v47, %v419_v2 }
 0x10e   :  { %808 = vrsqrt.f32 %v1150_v27  ;;  %v405_v60 = vmul.f32 %v1159_v42, %v404_v28  ;;  %v123_v13 = vsel %vm117_vm2, %v121_v29, %v122_v63  ;;  %v397_v18 = vmul.f32 %v396_v19, %v1091_v54 }
 0x10f   :  { %v489_v23 = vmul.f32 %v1164_v45, %v488_v55  ;;  %810 = vrsqrt.f32 %v1185_v41  ;;  %v401_v37 = vand.u32 2147483648, %v1091_v54  ;;  %v516_v9 = vmul.f32 %v1133_v61, %v515_v5 }
 0x110   :  { %v338_v24 = vpop.permute.xlu2 %337  ;;  %v406_v47 = vmul.f32 0.5, %v405_v60  ;;  %v252_v0 = vmul.f32 %v172_v33, %v172_v33  ;;  %v161_v29 = vsub.f32 %v942_v3, %v123_v13  ;;  %v421_v35 = vmul.f32 %v420_v7, %v1094_v58 }
 0x111   :  { %v334_v4 = vpop.permute.xlu0 %333  ;;  %v372_v38 = vadd.f32 %v338_v24, %v251_v21  ;;  %v490_v32 = vmul.f32 0.5, %v489_v23  ;;  %vm424_vm10 = vcmp.eq.f32.partialorder %v1094_v58, 0.0  ;;  %vm520_vm11 = vcmp.eq.f32.partialorder %v1097_v16, 0.0 }
 0x112   :  { %v370_v30 = vadd.f32 %v334_v4, %v249_v59  ;;  %v399_v61 = vsel %vm398_vm6, %v1091_v54, %v397_v18  ;;  %v425_v48 = vand.u32 2147483648, %v1094_v58  ;;  %v131_v3 = vrot.slane %v962_v10, 7 }
 0x113   :  { %v1178_v56 = vpop.eup %806  ;;  %v1227_v51 = vadd.f32 1e-08, %v372_v38  ;;  %v407_v53 = vsub.f32 1.5, %v406_v47  ;;  %v491_v28 = vsub.f32 1.5, %v490_v32  ;;  %v517_v57 = vmul.f32 %v516_v9, %v1097_v16 }
 0x114   :  { %v464_v12 = vmul.f32 %v1178_v56, %v1148_v26  ;;  %v1188_v31 = vpop.eup %808  ;;  %v1215_v40 = vadd.f32 1e-08, %v370_v30  ;;  %v241_v2 = vmul.f32 %v161_v29, %v161_v29  ;;  %v423_v63 = vsel %vm422_vm9, %v1094_v58, %v421_v35 }
 0x115   :  { %v476_v34 = vmul.f32 %v1188_v31, %v1150_v27  ;;  %v1230_v52 = vpop.eup %810  ;;  %vm410_vm12 = vcmp.eq.f32.partialorder %v1116_v39, inf  ;;  %v132_v54 = vsel %vm117_vm2, %v130_v22, %v131_v3  ;;  %v408_v24 = vmul.f32 %v1159_v42, %v407_v53 }
 0x116   :  { %v465_v20 = vmul.f32 %v1178_v56, %v464_v12  ;;  %812 = vrsqrt.f32 %v1215_v40  ;;  %v402_v12 = vsel %vm400_vm7, %v401_v37, %v399_v61  ;;  %v452_v23 = vmul.f32 %v1230_v52, %v1185_v41 }
 0x117   :  { %v477_v46 = vmul.f32 %v1188_v31, %v476_v34  ;;  %814 = vrsqrt.f32 %v1227_v51  ;;  %v492_v25 = vmul.f32 %v1164_v45, %v491_v28  ;;  %v426_v30 = vsel %vm424_vm10, %v425_v48, %v423_v63 }
 0x118   :  { %v336_v36 = vpop.permute.xlu1 %335  ;;  %v466_v43 = vmul.f32 0.5, %v465_v20  ;;  %v413_v33 = vand.u32 2147483648, %v1116_v39  ;;  %vm494_vm14 = vcmp.eq.f32.partialorder %v1122_v49, inf  ;;  %v497_v8 = vand.u32 2147483648, %v1122_v49 }
 0x119   :  { %v340_v6 = vpop.permute.xlu0 %339  ;;  %v371_v4 = vadd.f32 %v336_v36, %v250_v44  ;;  %v478_v19 = vmul.f32 0.5, %v477_v46  ;;  %vm470_vm15 = vcmp.eq.f32.partialorder %v1148_v26, inf  ;;  %v167_v42 = vsub.f32 %v962_v10, %v132_v54 }
 0x11a   :  { %v467_v55 = vsub.f32 1.5, %v466_v43  ;;  %v373_v59 = vadd.f32 %v340_v6, %v252_v0  ;;  %v519_v58 = vsel %vm518_vm8, %v1097_v16, %v517_v57  ;;  %vm496_vm0 = vcmp.eq.f32.partialorder %v1122_v49, 0.0 }
 0x11b   :  { %v1239_v21 = vadd.f32 1e-08, %v371_v4  ;;  %v479_v22 = vsub.f32 1.5, %v478_v19  ;;  %v453_v34 = vmul.f32 %v1230_v52, %v452_v23  ;;  %v651_v36 = vsel %vm649_vm5, %v426_v30, 0.0 }
 0x11c   :  { %v1245_v20 = vadd.f32 1e-08, %v373_v59  ;;  %v468_v5 = vmul.f32 %v1178_v56, %v467_v55  ;;  %v1261_v45 = vpop.eup %812  ;;  %v650_v56 = vsel %vm649_vm5, %v402_v12, 0.0  ;;  %v409_v13 = vmul.f32 %v408_v24, %v1116_v39 }
 0x11d   :  { %816 = vrsqrt.f32 %v1239_v21  ;;  %v493_v10 = vmul.f32 %v492_v25, %v1122_v49  ;;  %v1274_v37 = vpop.eup %814  ;;  %vm412_vm3 = vcmp.eq.f32.partialorder %v1116_v39, 0.0  ;;  %vm472_vm4 = vcmp.eq.f32.partialorder %v1148_v26, 0.0 }
 0x11e   :  { %818 = vrsqrt.f32 %v1245_v20  ;;  %v469_v18 = vmul.f32 %v468_v5, %v1148_v26  ;;  %v473_v38 = vand.u32 2147483648, %v1148_v26  ;;  %v140_v32 = vrot.slane %v978_v15, 7 }
 0x11f   :  { %v522_v44 = vsel %vm520_vm11, %v521_v17, %v519_v58  ;;  %v480_v9 = vmul.f32 %v1188_v31, %v479_v22  ;;  %vm482_vm6 = vcmp.eq.f32.partialorder %v1150_v27, inf  ;;  %v524_v0 = vmul.f32 %v1261_v45, %v1215_v40 }
 0x120   :  { %v318_v60 = vpop.permute.xlu1 %317  ;;  %v247_v29 = vmul.f32 %v167_v42, %v167_v42  ;;  %v652_v46 = vadd.f32 %v651_v36, %v650_v56  ;;  %v454_v6 = vmul.f32 0.5, %v453_v34  ;;  %v411_v16 = vsel %vm410_vm12, %v1116_v39, %v409_v13 }
 0x121   :  { %v362_v7 = vadd.f32 %v318_v60, %v241_v2  ;;  %v495_v31 = vsel %vm494_vm14, %v1122_v49, %v493_v10  ;;  %v471_v17 = vsel %vm470_vm15, %v1148_v26, %v469_v18  ;;  %v548_v48 = vmul.f32 %v1274_v37, %v1227_v51 }
 0x122   :  { %vm484_vm7 = vcmp.eq.f32.partialorder %v1150_v27, 0.0  ;;  %v141_v55 = vsel %vm117_vm2, %v139_v1, %v140_v32  ;;  %v481_v4 = vmul.f32 %v480_v9, %v1150_v27  ;;  %v525_v57 = vmul.f32 %v1261_v45, %v524_v0 }
 0x123   :  { %v1279_v47 = vadd.f32 1e-08, %v362_v7  ;;  %v1282_v43 = vpop.eup %816  ;;  %v173_v2 = vsub.f32 %v978_v15, %v141_v55  ;;  %v910_v12 = vmov 0.0   ;;  %v455_v63 = vsub.f32 1.5, %v454_v6 }
 0x124   :  { %v536_v61 = vmul.f32 %v1282_v43, %v1239_v21  ;;  %v1306_v3 = vpop.eup %818  ;;  %63 = vst.msk [vmem:[#allocation2] sm:$0xff] %vm62_vm13, %v910_v12  ;;  %vm64_vm8 = vcmask 111616   ;;  %v1323_v14 = vsel %vm649_vm5, %v522_v44, 0.0  ;;  %v485_v1 = vand.u32 2147483648, %v1150_v27 }
 0x125   :  { %820 = vrsqrt.f32 %v1279_v47  ;;  %v560_v59 = vmul.f32 %v1306_v3, %v1245_v20  ;;  %67 = vst.msk [vmem:[#allocation3] sm:$0xff] %vm66_vm1, %v910_v12  ;;  %v253_v54 = vmul.f32 %v173_v2, %v173_v2  ;;  %v474_v24 = vsel %vm472_vm4, %v473_v38, %v471_v17 }
 0x126   :  { %v537_v53 = vmul.f32 %v1282_v43, %v536_v61  ;;  %65 = vst.msk [vmem:[#allocation2 + $0x8] sm:$0x3f] %vm64_vm8, %v910_v12  ;;  %v461_v25 = vand.u32 2147483648, %v1185_v41  ;;  %v549_v5 = vmul.f32 %v1274_v37, %v548_v48  ;;  %v414_v30 = vsel %vm412_vm3, %v413_v33, %v411_v16 }
 0x127   :  { %v561_v23 = vmul.f32 %v1306_v3, %v560_v59  ;;  %68 = vst.msk [vmem:[#allocation3 + $0x8] sm:$0xff] %vm66_vm1, %v910_v12  ;;  %v498_v7 = vsel %vm496_vm0, %v497_v8, %v495_v31  ;;  %vm458_vm2 = vcmp.eq.f32.partialorder %v1185_v41, inf  ;;  %v526_v26 = vmul.f32 0.5, %v525_v57 }
 0x128   :  { %v330_v35 = vpop.permute.xlu1 %329  ;;  %v538_v19 = vmul.f32 0.5, %v537_v53  ;;  %v654_v58 = vadd.f32 %v1191_v62, %v652_v46  ;;  %v483_v56 = vsel %vm482_vm6, %v1150_v27, %v481_v4  ;;  %v456_v39 = vmul.f32 %v1230_v52, %v455_v63 }
 0x129   :  { %v368_v28 = vadd.f32 %v330_v35, %v247_v29  ;;  %v655_v34 = vsel %vm649_vm5, %v474_v24, 0.0  ;;  %v562_v36 = vmul.f32 0.5, %v561_v23  ;;  %v666_v13 = vsel %vm62_vm13, %v414_v30, 0.0 }
 0x12a   :  { %v539_v33 = vsub.f32 1.5, %v538_v19  ;;  %v657_v10 = vsel %vm649_vm5, %v498_v7, 0.0  ;;  %v550_v18 = vmul.f32 0.5, %v549_v5  ;;  %v557_v38 = vand.u32 2147483648, %v1227_v51 }
 0x12b   :  { %v1319_v60 = vadd.f32 1e-08, %v368_v28  ;;  %v821_v15 = vpop.eup %820  ;;  %v486_v62 = vsel %vm484_vm7, %v485_v1, %v483_v56  ;;  %vm460_vm9 = vcmp.eq.f32.partialorder %v1185_v41, 0.0  ;;  %v527_v32 = vsub.f32 1.5, %v526_v26 }
 0x12c   :  { %v428_v22 = vmul.f32 %v821_v15, %v1279_v47  ;;  %v656_v0 = vadd.f32 %v655_v34, %v654_v58  ;;  %v457_v29 = vmul.f32 %v456_v39, %v1185_v41  ;;  %vm530_vm10 = vcmp.eq.f32.partialorder %v1215_v40, inf  ;;  %v694_v57 = vld [vmem:[#allocation3] sm:$0xff] }
 0x12d   :  { %822 = vrsqrt.f32 %v1319_v60  ;;  %v540_v35 = vmul.f32 %v1282_v43, %v539_v33  ;;  %v533_v46 = vand.u32 2147483648, %v1215_v40  ;;  %v563_v6 = vsub.f32 1.5, %v562_v36 }
 0x12e   :  { %v429_v49 = vmul.f32 %v821_v15, %v428_v22  ;;  %v671_v16 = vsel %vm62_vm13, %v486_v62, 0.0  ;;  %v551_v31 = vsub.f32 1.5, %v550_v18  ;;  %vm542_vm11 = vcmp.eq.f32.partialorder %v1239_v21, inf  ;;  %v695_v59 = vld [vmem:[#allocation3 + $0x8] sm:$0xff] }
 0x12f   :  { %v528_v17 = vmul.f32 %v1261_v45, %v527_v32  ;;  %vm532_vm12 = vcmp.eq.f32.partialorder %v1215_v40, 0.0  ;;  %vm544_vm14 = vcmp.eq.f32.partialorder %v1239_v21, 0.0  ;;  %v658_v53 = vadd.f32 %v657_v10, %v656_v0 }
 0x130   :  { %v342_v42 = vpop.permute.xlu1 %341  ;;  %v430_v52 = vmul.f32 0.5, %v429_v49  ;;  %v459_v28 = vsel %vm458_vm2, %v1185_v41, %v457_v29  ;;  %v541_v55 = vmul.f32 %v540_v35, %v1239_v21  ;;  %v545_v4 = vand.u32 2147483648, %v1239_v21 }
 0x131   :  { %v374_v8 = vadd.f32 %v342_v42, %v253_v54  ;;  %vm554_vm15 = vcmp.eq.f32.partialorder %v1227_v51, inf  ;;  %v564_v45 = vmul.f32 %v1306_v3, %v563_v6  ;;  %v727_v63 = vadd.f32 %v1180_v11, %v694_v57 }
 0x132   :  { %v431_v61 = vsub.f32 1.5, %v430_v52  ;;  %v552_v19 = vmul.f32 %v1274_v37, %v551_v31  ;;  %vm434_vm0 = vcmp.eq.f32.partialorder %v1279_v47, inf  ;;  %v437_v1 = vand.u32 2147483648, %v1279_v47 }
 0x133   :  { %v1356_v44 = vadd.f32 1e-08, %v374_v8  ;;  %v823_v9 = vpop.eup %822  ;;  %v728_v23 = vadd.f32 %v1171_v50, %v695_v59  ;;  %v529_v54 = vmul.f32 %v528_v17, %v1215_v40  ;;  %vm436_vm3 = vcmp.eq.f32.partialorder %v1279_v47, 0.0  ;;  %729 = vst.msk [vmem:[#allocation3] sm:$0xff] %vm66_vm1, %v727_v63 }
 0x134   :  { %v500_v27 = vmul.f32 %v823_v9, %v1319_v60  ;;  %v432_v43 = vmul.f32 %v821_v15, %v431_v61  ;;  %v462_v11 = vsel %vm460_vm9, %v461_v25, %v459_v28  ;;  %v543_v37 = vsel %vm542_vm11, %v1239_v21, %v541_v55 }
 0x135   :  { %824 = vrsqrt.f32 %v1356_v44  ;;  %vm566_vm4 = vcmp.eq.f32.partialorder %v1245_v20, inf  ;;  %730 = vst.msk [vmem:[#allocation3 + $0x8] sm:$0xff] %vm66_vm1, %v728_v23  ;;  %v553_v26 = vmul.f32 %v552_v19, %v1227_v51  ;;  %vm568_vm6 = vcmp.eq.f32.partialorder %v1245_v20, 0.0  ;;  %v647_v19 = vld [vmem:[#allocation2] sm:$0xff] }
 0x136   :  { %v501_v48 = vmul.f32 %v823_v9, %v500_v27  ;;  %v433_v2 = vmul.f32 %v432_v43, %v1279_v47  ;;  %v569_v41 = vand.u32 2147483648, %v1245_v20  ;;  %v669_v22 = vsel %vm62_vm13, %v462_v11, 0.0 }
 0x137   :  { %v531_v42 = vsel %vm530_vm10, %v1215_v40, %v529_v54  ;;  %v546_v39 = vsel %vm544_vm14, %v545_v4, %v543_v37  ;;  %vm506_vm7 = vcmp.eq.f32.partialorder %v1319_v60, inf  ;;  %v509_v34 = vand.u32 2147483648, %v1319_v60 }
 0x138   :  { %v502_v12 = vmul.f32 0.5, %v501_v48  ;;  %v435_v15 = vsel %vm434_vm0, %v1279_v47, %v433_v2  ;;  %v565_v47 = vmul.f32 %v564_v45, %v1245_v20  ;;  %vm508_vm2 = vcmp.eq.f32.partialorder %v1319_v60, 0.0  ;;  %v648_v2 = vld [vmem:[#allocation2 + $0x8] sm:$0x3f] }
 0x139   :  { %v438_v50 = vsel %vm436_vm3, %v437_v1, %v435_v15  ;;  %v534_v21 = vsel %vm532_vm12, %v533_v46, %v531_v42  ;;  %v661_v32 = vsel %vm649_vm5, %v546_v39, 0.0  ;;  %vm556_vm9 = vcmp.eq.f32.partialorder %v1227_v51, 0.0 }
 0x13a   :  { %v503_v3 = vsub.f32 1.5, %v502_v12  ;;  %v667_v5 = vsel %vm62_vm13, %v438_v50, 0.0  ;;  %v567_v36 = vsel %vm566_vm4, %v1245_v20, %v565_v47  ;;  %v748_v62 = vld [vmem:[#allocation3] sm:$0xff]  ;;  %v675_v46 = vsel %vm62_vm13, %v534_v21, 0.0 }
 0x13b   :  { %v825_v24 = vpop.eup %824  ;;  %v668_v25 = vadd.f32 %v667_v5, %v666_v13  ;;  %v555_v13 = vsel %vm554_vm15, %v1227_v51, %v553_v26  ;;  %v750_v29 = vsel %vm66_vm1, %v748_v62, 0.0  ;;  %v570_v35 = vsel %vm568_vm6, %v569_v41, %v567_v36 }
 0x13c   :  { %v504_v30 = vmul.f32 %v823_v9, %v503_v3  ;;  %v572_v7 = vmul.f32 %v825_v24, %v1356_v44  ;;  %v749_v0 = vld [vmem:[#allocation3 + $0x8] sm:$0xff]  ;;  %v663_v43 = vsel %vm649_vm5, %v570_v35, 0.0  ;;  %vm578_vm10 = vcmp.eq.f32.partialorder %v1356_v44, inf }
 0x13d   :  { %v670_v33 = vadd.f32 %v669_v22, %v668_v25  ;;  %v751_v40 = vsel %vm66_vm1, %v749_v0, 0.0  ;;  %v581_v48 = vand.u32 2147483648, %v1356_v44  ;;  %vm580_vm11 = vcmp.eq.f32.partialorder %v1356_v44, 0.0 }
 0x13e   :  { %v505_v58 = vmul.f32 %v504_v30, %v1319_v60  ;;  %v573_v56 = vmul.f32 %v825_v24, %v572_v7  ;;  %v752_v27 = vadd.f32 %v751_v40, %v750_v29  ;;  %vm683_vm5 = vcmask 1045504  }
 0x13f   :  { %v672_v18 = vadd.f32 %v671_v16, %v670_v33  ;;  %v558_v16 = vsel %vm556_vm9, %v557_v38, %v555_v13 }
 0x140   :  { %v507_v49 = vsel %vm506_vm7, %v1319_v60, %v505_v58  ;;  %v574_v8 = vmul.f32 0.5, %v573_v56  ;;  %v660_v60 = vadd.f32 %v1323_v14, %v658_v53  ;;  %v753_v20 = vrot.slane %v752_v27, 4 }
 0x141   :  { %v510_v10 = vsel %vm508_vm2, %v509_v34, %v507_v49  ;;  %v677_v53 = vsel %vm62_vm13, %v558_v16, 0.0 }
 0x142   :  { %v673_v52 = vsel %vm62_vm13, %v510_v10, 0.0  ;;  %v575_v9 = vsub.f32 1.5, %v574_v8  ;;  %v662_v31 = vadd.f32 %v661_v32, %v660_v60  ;;  %v754_v55 = vadd.f32 %v753_v20, %v752_v27 }
 0x143   :  { %v674_v6 = vadd.f32 %v673_v52, %v672_v18 }
 0x144   :  { %v576_v61 = vmul.f32 %v825_v24, %v575_v9  ;;  %v664_v51 = vadd.f32 %v663_v43, %v662_v31  ;;  %v755_v59 = vrot.slane %v754_v55, 2 }
 0x145   :  { %v676_v17 = vadd.f32 %v675_v46, %v674_v6 }
 0x146   :  { %v577_v14 = vmul.f32 %v576_v61, %v1356_v44  ;;  %v756_v12 = vadd.f32 %v755_v59, %v754_v55  ;;  %v684_v63 = vrot.slane %v664_v51, 2 }
 0x147   :  { %v678_v4 = vadd.f32 %v677_v53, %v676_v17 }
 0x148   :  { %v579_v28 = vsel %vm578_vm10, %v1356_v44, %v577_v14  ;;  %v757_v23 = vrot.slane %v756_v12, 1 }
 0x149   :  { %v582_v38 = vsel %vm580_vm11, %v581_v48, %v579_v28 }
 0x14a   :  { %v679_v57 = vsel %vm62_vm13, %v582_v38, 0.0  ;;  %v758_v24 = vadd.f32 %v757_v23, %v756_v12 }
 0x14b   :  { %v680_v45 = vadd.f32 %v679_v57, %v678_v4 }
 0x14c   :  { %v759_v44 = vsel %vm66_vm1, %v758_v24, 0.0  ;;  %vm766_vm1 = vcmask 0  }
 0x14d   :  { %v685_v1 = vrot.slane %v680_v45, 2  ;;  %760 = vadd.xlane.f32.xlu0 %v759_v44 }
 0x14f   :  { %v686_v54 = vsel %vm683_vm5, %v684_v63, %v685_v1  ;;  %v690_v15 = vadd.f32 %v685_v1, %v648_v2 }
 0x150   :  { %v689_v3 = vadd.f32 %v686_v54, %v647_v19 }
 0x151   :  { %693 = vst.msk [vmem:[#allocation2 + $0x8] sm:$0x3f] %vm64_vm8, %v690_v15 }
 0x152   :  { %691 = vst.msk [vmem:[#allocation2] sm:$0xff] %vm62_vm13, %v689_v3 }
 0x158   :  { %v735_v11 = vld [vmem:[#allocation2 + $0x8] sm:$0x3f] }
 0x159   :  { %v734_v37 = vld [vmem:[#allocation2] sm:$0xff]  ;;  %v737_v50 = vsel %vm64_vm8, %v735_v11, 0.0 }
 0x15a   :  { %v736_v47 = vsel %vm62_vm13, %v734_v37, 0.0 }
 0x15b   :  { %v738_v5 = vadd.f32 %v737_v50, %v736_v47 }
 0x15d   :  { %v739_v30 = vrot.slane %v738_v5, 4 }
 0x15f   :  { %v740_v7 = vadd.f32 %v739_v30, %v738_v5 }
 0x161   :  { %v741_v26 = vrot.slane %v740_v7, 2 }
 0x163   :  { %v742_v41 = vadd.f32 %v741_v26, %v740_v7 }
 0x165   :  { %v743_v25 = vrot.slane %v742_v41, 1 }
 0x167   :  { %v744_v22 = vadd.f32 %v743_v25, %v742_v41 }
 0x169   :  { %v745_v42 = vsel %vm62_vm13, %v744_v22, 0.0 }
 0x16a   :  { %746 = vadd.xlane.f32.xlu2 %v745_v42 }
 0x1c0   :  { %v761_v58 = vpop.xlane.xlu0 %760 }
 0x1c1   :  { %v764_v33 = vmul.f32 0.00048828125, %v761_v58 }
 0x1dd   :  { %v747_v56 = vpop.xlane.xlu2 %746 }
 0x1de   :  { %v762_v39 = vmul.f32 0.0006377551, %v747_v56 }
 0x1e0   :  { %v763_v34 = vmul.f32 10.0, %v762_v39 }
 0x1e2   :  { %v765_v36 = vadd.f32 %v764_v33, %v763_v34 }
 0x1e4   :  { %767 = vst.msk [vmem:[#allocation9] sm:$0x1] %vm766_vm1, %v765_v36 }
 0x1e5   :  { %778 = dma.vmem_to_hbm [thread:$0]  %s774_s22, 16, %s776_s25, [#allocation6]  }
 0x1e6   :  { %902 = dma.done.wait [#allocation6], 16  }
 0x1e7   :  { %903 = vsyncadd [#allocation6], 4294967280 }
 0x1e8   :  { %783 = vsyncpa [#allocation5], 1 }
 0x1e9   :  { %784 = vsyncpa [#allocation8], 1 }
 0x1ea   :  { %785 = vsyncpa [#allocation6], 1 }

</bundles_post_ra>
